<compile_context>
chip_gen: v7x
topology: tpu7x:2x2x1
jax: 0.10.0
libtpu: 0.0.40
codegen_flags: <defaults>
</compile_context>

<pallas_src>
import functools

import jax
import jax.numpy as jnp
from jax import lax
from jax.experimental import pallas as pl
from jax.experimental.pallas import tpu as pltpu


def _pos_enc_kernel(w_ref, b_ref, o_ref, *, seq_len: int, tile_l: int):
    # w_ref: (1, D)  -- Linear weight (D, 1) transposed, f32
    # b_ref: (1, D)  -- Linear bias, f32
    # o_ref: (tile_l, D) -- one sequence tile of the batch-invariant slab
    i0 = pl.program_id(0) * tile_l
    pos = (i0 + lax.broadcasted_iota(jnp.int32, (tile_l, 1), 0)).astype(jnp.float32)
    # idx / idx.max() == i / (L - 1).  (L == 1 -> 0/0 -> NaN, PyTorch parity.)
    pos = pos / jnp.float32(seq_len - 1)
    out = pos * w_ref[...] + b_ref[...]        # (tile_l,1)*(1,D)+(1,D) -> (tile_l,D)
    o_ref[...] = out.astype(o_ref.dtype)


def custom_positional_encoding(x, weight, bias):
    """x: (B, L, E) -- only shape/dtype used.  weight: (D, 1), bias: (D,)."""
    B, L = x.shape[:2]
    D, k_in = weight.shape
    assert k_in == 1, f"expected nn.Linear(1, d_model) weight (D, 1), got {weight.shape}"
    assert bias.shape == (D,), f"expected bias shape ({D},), got {bias.shape}"

    # Linear(1, D) computed in f32 (as PyTorch nn.Linear would); cast to
    # x.dtype on store.
    w_row = weight.reshape(1, D).astype(jnp.float32)
    b_row = bias.reshape(1, D).astype(jnp.float32)

    # Tile the sequence axis: full L for small slabs (single block, as in the
    # test config), otherwise ~2 MiB multiple-of-8 tiles -> >=2 parallel
    # blocks for v7x's dual TensorCores and comfortable VMEM headroom on all
    # generations (double-buffered block << 16 MiB).
    itemsize = jnp.dtype(x.dtype).itemsize
    if L * D * itemsize <= (4 << 20):
        tile_l = L
    else:
        tile_l = max(8, min(L, ((2 << 20) // (D * itemsize)) // 8 * 8))
    grid = (pl.cdiv(L, tile_l),)

    kernel = functools.partial(_pos_enc_kernel, seq_len=L, tile_l=tile_l)

    slab = pl.pallas_call(
        kernel,
        out_shape=jax.ShapeDtypeStruct((L, D), x.dtype),
        grid=grid,
        in_specs=[
            pl.BlockSpec((1, D), lambda i: (0, 0)),   # weight row, resident in VMEM
            pl.BlockSpec((1, D), lambda i: (0, 0)),   # bias row, resident in VMEM
        ],
        out_specs=pl.BlockSpec((tile_l, D), lambda i: (i, 0)),
        compiler_params=pltpu.CompilerParams(
            dimension_semantics=("parallel",)),
    )(w_row, b_row)

    # Batch replication outside the kernel: fuses into any consumer, or lowers
    # to a single lane-dense XLA broadcast if materialized standalone.
    return jnp.broadcast_to(slab[None], (B, L, D))


def _reference(x, weight, bias):
    B, L = x.shape[:2]
    idx = jnp.broadcast_to(jnp.arange(L, dtype=x.dtype), (B, L))[..., None]  # (B,L,1)
    idx = idx / jnp.max(idx)
    return idx @ weight.T.astype(x.dtype) + bias.astype(x.dtype)


if __name__ == "__main__":
    key = jax.random.PRNGKey(0)
    k_x, k_w, k_b = jax.random.split(key, 3)

    B, L, D = 2, 8, 32          # batch=2, seq=8, d_model=32
    x = jax.random.normal(k_x, (B, L, D), dtype=jnp.float32)

    # nn.Linear(1, d_model): weight (D, 1), bias (D,), uniform(-1, 1) (fan_in=1)
    weight = jax.random.uniform(k_w, (D, 1), jnp.float32, -1.0, 1.0)
    bias = jax.random.uniform(k_b, (D,), jnp.float32, -1.0, 1.0)

    out = jax.jit(custom_positional_encoding)(x, weight, bias)
    out = jax.block_until_ready(out)

    ref = _reference(x, weight, bias)
    assert out.shape == (B, L, D)
    assert jnp.allclose(out, ref, atol=1e-5, rtol=1e-5), "mismatch vs reference"

    print("KERNEL_OK")
</pallas_src>

<mosaic_0001>
module attributes {stable_mosaic.version = 11 : i64} {
  func.func @_pos_enc_kernel(%arg0: i32, %arg1: memref<1x32xf32, #tpu.memory_space<vmem>>, %arg2: memref<1x32xf32, #tpu.memory_space<vmem>>, %arg3: memref<8x32xf32, #tpu.memory_space<vmem>>) attributes {dimension_semantics = [#tpu.dimension_semantics<parallel>], iteration_bounds = array<i64: 1>, scalar_prefetch = 0 : i64, scratch_operands = 0 : i64, tpu.core_type = #tpu.core_type<tc>, window_params = [{pipeline_mode = #tpu.pipeline_mode<synchronous>, transform_indices = @transform_0, window_bounds = array<i64: 1, 32>}, {pipeline_mode = #tpu.pipeline_mode<synchronous>, transform_indices = @transform_1, window_bounds = array<i64: 1, 32>}, {transform_indices = @transform_2, window_bounds = array<i64: 8, 32>}]} {
    %c8_i32 = arith.constant 8 : i32
    %0 = arith.muli %arg0, %c8_i32 : i32
    %1 = tpu.iota {dimensions = array<i32: 0>} : vector<8x1xi32>
    %2 = vector.broadcast %0 : i32 to vector<8x1xi32>
    %3 = arith.addi %2, %1 : vector<8x1xi32>
    %4 = arith.sitofp %3 : vector<8x1xi32> to vector<8x1xf32>
    %cst = arith.constant 7.000000e+00 : f32
    %5 = vector.broadcast %cst : f32 to vector<8x1xf32>
    %6 = arith.divf %4, %5 : vector<8x1xf32>
    %c0 = arith.constant 0 : index
    %c0_0 = arith.constant 0 : index
    %7 = vector.load %arg1[%c0, %c0_0] : memref<1x32xf32, #tpu.memory_space<vmem>>, vector<1x32xf32>
    %8 = vector.broadcast %6 : vector<8x1xf32> to vector<8x32xf32>
    %9 = vector.broadcast %7 : vector<1x32xf32> to vector<8x32xf32>
    %10 = arith.mulf %8, %9 : vector<8x32xf32>
    %c0_1 = arith.constant 0 : index
    %c0_2 = arith.constant 0 : index
    %11 = vector.load %arg2[%c0_1, %c0_2] : memref<1x32xf32, #tpu.memory_space<vmem>>, vector<1x32xf32>
    %12 = vector.broadcast %11 : vector<1x32xf32> to vector<8x32xf32>
    %13 = arith.addf %10, %12 : vector<8x32xf32>
    %c0_3 = arith.constant 0 : index
    %c0_4 = arith.constant 0 : index
    %14 = vector.load %arg3[%c0_3, %c0_4] : memref<8x32xf32, #tpu.memory_space<vmem>>, vector<8x32xf32>
    tpu.vector_store %arg3[%c0_3, %c0_4], %13 {strides = array<i32>} : memref<8x32xf32, #tpu.memory_space<vmem>>, vector<8x32xf32>,
    return
  }
  func.func @transform_0(%arg0: i32) -> (i32, i32) {
    %c0_i32 = arith.constant 0 : i32
    %c0_i32_0 = arith.constant 0 : i32
    %c0_i32_1 = arith.constant 0 : i32
    return %c0_i32, %c0_i32_0 : i32, i32
  }
  func.func @transform_1(%arg0: i32) -> (i32, i32) {
    %c0_i32 = arith.constant 0 : i32
    %c0_i32_0 = arith.constant 0 : i32
    %c0_i32_1 = arith.constant 0 : i32
    return %c0_i32, %c0_i32_0 : i32, i32
  }
  func.func @transform_2(%arg0: i32) -> (i32, i32) {
    %c0_i32 = arith.constant 0 : i32
    %c0_i32_0 = arith.constant 0 : i32
    return %arg0, %c0_i32 : i32, i32
  }
}

</mosaic_0001>

<bundles_post_ra>
// kernel: custom_positional_encoding.1
= control target key start
LH: loop header
LB: loop body
LE: loop exit
PB: predicated region body
PF: predicated region fallthrough
CT: control target
= control target key end

     0   :  { %v12_v0 = vlaneseq  ;;  %vm35_vm0 = vcmask 261120   ;;  %s67_s0 = inlined_call_operand.vmem [shape: f32[1,32], index: 0, kind: input, shape index: {}]   ;;  %s68_s1 = inlined_call_operand.vmem [shape: f32[1,32], index: 1, kind: input, shape index: {}]   ;;  %s69_s2 = inlined_call_operand.vmem [shape: f32[8,32], index: 2, kind: output, shape index: {}]  }
   0x1   :  { %v41_v3 = vld [vmem:[%s67_s0] ss:$0 sm:$0xff] }
   0x2   :  { %v13_v1 = vshrl.u32 %v12_v0, 7  ;;  %v42_v5 = vld [vmem:[%s68_s1] ss:$0 sm:$0xff] }
   0x4   :  { %v16_v2 = vcvt.s32.f32 %v13_v1 }
   0x6   :  { %v18_v4 = vmul.f32 0.14285715, %v16_v2 }
   0x8   :  { %v26_v6 = vmul.f32 %v41_v3, %v18_v4 }
   0xa   :  { %v34_v7 = vadd.f32 %v42_v5, %v26_v6 }
   0xc   :  { %36 = vst.msk [vmem:[%s69_s2] sm:$0xff] %vm35_vm0, %v34_v7 }

</bundles_post_ra>
